<compile_context>
chip_gen: v7x
topology: tpu7x:2x2x1
jax: 0.10.0
libtpu: 0.0.40
codegen_flags: <defaults>
</compile_context>

<pallas_src>
import functools

import jax
import jax.numpy as jnp
from jax.experimental import pallas as pl
from jax.experimental.pallas import tpu as pltpu

_LANE = 128
# 2048 rows * 128 lanes * 4 B = 1 MiB per f32 operand block.
_MAX_BLOCK_ROWS = 2048


def _sq_diff_kernel(p_ref, t_ref, o_ref):
    # elementwise (pred - target)**2 on one VMEM tile, computed in f32
    d = p_ref[...].astype(jnp.float32) - t_ref[...].astype(jnp.float32)
    o_ref[...] = (d * d).astype(o_ref.dtype)


def _mse_sum_kernel(p_ref, t_ref, o_ref, acc_ref, *,
                    rows_total, block_rows, inv_n, need_mask):
    # Accumulate sum((pred - target)**2) into a VMEM (1, 128) vector scratch.
    # Cross-lane reduce + mean scale + scalar store only on the last step.
    i = pl.program_id(0)

    @pl.when(i == 0)
    def _():
        acc_ref[...] = jnp.zeros_like(acc_ref)

    d = p_ref[...].astype(jnp.float32) - t_ref[...].astype(jnp.float32)
    sq = d * d

    if need_mask:
        # Boundary block: rows past the real array hold undefined data.
        row = jax.lax.broadcasted_iota(jnp.int32, sq.shape, 0) + i * block_rows
        sq = jnp.where(row < rows_total, sq, 0.0)

    # Reduce over the sublane/row axis only (VPU adds + tiny sublane reduce);
    # no per-step cross-lane reduction, no SMEM scalar read-modify-write.
    acc_ref[...] += jnp.sum(sq, axis=0, keepdims=True)

    @pl.when(i == pl.num_programs(0) - 1)
    def _():
        # Single cross-lane reduce; fold the 1/N of the mean into the write.
        o_ref[0, 0] = jnp.sum(acc_ref[...]) * jnp.float32(inv_n)


def _to_2d(x):
    """Flatten to (rows, 128). Zero-copy when numel % 128 == 0; otherwise the
    small remainder is zero-padded (zeros contribute 0 to the squared-diff sum).
    Returns (x2d, n_valid, pad)."""
    flat = x.reshape(-1)
    n = flat.shape[0]
    pad = (-n) % _LANE
    if pad:
        flat = jnp.concatenate([flat, jnp.zeros((pad,), dtype=flat.dtype)])
    return flat.reshape(-1, _LANE), n, pad


@functools.partial(jax.jit, static_argnames=("keep_batch_dim",))
def custom_mse_loss(pred, target, keep_batch_dim=False):
    assert pred.shape == target.shape, "pred/target shape mismatch"
    orig_shape = pred.shape

    p2d, n_valid, pad = _to_2d(pred)
    t2d, _, _ = _to_2d(target)
    rows = p2d.shape[0]

    # Large blocks: whole slab if it fits, else 1 MiB-per-operand tiles.
    block_rows = rows if rows <= _MAX_BLOCK_ROWS else _MAX_BLOCK_ROWS
    grid = (pl.cdiv(rows, block_rows),)
    tile_spec = pl.BlockSpec((block_rows, _LANE), lambda i: (i, 0))

    if keep_batch_dim:
        # reduction='none': elementwise squared error, original shape/dtype.
        out2d = pl.pallas_call(
            _sq_diff_kernel,
            out_shape=jax.ShapeDtypeStruct((rows, _LANE), pred.dtype),
            grid_spec=pltpu.PrefetchScalarGridSpec(
                num_scalar_prefetch=0,
                grid=grid,
                in_specs=[tile_spec, tile_spec],
                out_specs=tile_spec,
            ),
            compiler_params=pltpu.CompilerParams(
                dimension_semantics=("parallel",)
            ),
        )(p2d, t2d)
        if pad == 0:
            return out2d.reshape(orig_shape)        # zero-copy
        return out2d.reshape(-1)[:n_valid].reshape(orig_shape)
    else:
        # Mean over ALL elements (scalar), computed fully inside the kernel.
        # TODO(synk): on v7x, split the reduction grid into an outer
        # "parallel" axis with per-core partial sums to use both TensorCores.
        need_mask = (rows % block_rows) != 0
        kernel = functools.partial(
            _mse_sum_kernel,
            rows_total=rows,
            block_rows=block_rows,
            inv_n=1.0 / float(n_valid),
            need_mask=need_mask,
        )
        mean_sq = pl.pallas_call(
            kernel,
            out_shape=jax.ShapeDtypeStruct((1, 1), jnp.float32),
            grid_spec=pltpu.PrefetchScalarGridSpec(
                num_scalar_prefetch=0,
                grid=grid,
                in_specs=[tile_spec, tile_spec],
                out_specs=pl.BlockSpec(
                    (1, 1), lambda i: (0, 0), memory_space=pltpu.SMEM
                ),
                scratch_shapes=[pltpu.VMEM((1, _LANE), jnp.float32)],
            ),
            compiler_params=pltpu.CompilerParams(
                dimension_semantics=("arbitrary",)
            ),
        )(p2d, t2d)
        return mean_sq[0, 0].astype(pred.dtype)


if __name__ == "__main__":
    key = jax.random.PRNGKey(0)
    kp, kt = jax.random.split(key)
    # small shapes consistent with the module's generic forward (NCHW example)
    pred = jax.random.normal(kp, (2, 4, 16, 16), dtype=jnp.float32)
    target = jax.random.normal(kt, (2, 4, 16, 16), dtype=jnp.float32)

    # mean-reduced loss (default path)
    loss = custom_mse_loss(pred, target, keep_batch_dim=False)
    loss = jax.block_until_ready(loss)

    # elementwise loss (keep_batch_dim=True path)
    mse_map = custom_mse_loss(pred, target, keep_batch_dim=True)
    mse_map = jax.block_until_ready(mse_map)

    # correctness check vs pure-JAX reference
    ref_map = (pred - target) ** 2
    ref_loss = ref_map.mean()
    assert mse_map.shape == pred.shape
    assert jnp.allclose(mse_map, ref_map, atol=1e-6, rtol=1e-6)
    assert jnp.allclose(loss, ref_loss, atol=1e-6, rtol=1e-6)

    print("KERNEL_OK")
</pallas_src>

<mosaic_0001>
module attributes {stable_mosaic.version = 11 : i64} {
  func.func @_mse_sum_kernel(%arg0: i32, %arg1: memref<16x128xf32, #tpu.memory_space<vmem>>, %arg2: memref<16x128xf32, #tpu.memory_space<vmem>>, %arg3: memref<1x1xf32, #tpu.memory_space<smem>>, %arg4: memref<1x128xf32, #tpu.memory_space<vmem>>) attributes {dimension_semantics = [#tpu.dimension_semantics<arbitrary>], iteration_bounds = array<i64: 1>, scalar_prefetch = 0 : i64, scratch_operands = 1 : i64, tpu.core_type = #tpu.core_type<tc>, window_params = [{transform_indices = @transform_0, window_bounds = array<i64: 16, 128>}, {transform_indices = @transform_1, window_bounds = array<i64: 16, 128>}, {transform_indices = @transform_2, window_bounds = array<i64: 1, 1>}]} {
    %c0_i32 = arith.constant 0 : i32
    %0 = arith.cmpi eq, %arg0, %c0_i32 : i32
    %1 = arith.extui %0 : i1 to i32
    %c0_i32_0 = arith.constant 0 : i32
    %2 = arith.cmpi ne, %1, %c0_i32_0 : i32
    scf.if %2 {
      %cst_10 = arith.constant 0.000000e+00 : f32
      %15 = vector.broadcast %cst_10 : f32 to vector<1x128xf32>
      %c0_11 = arith.constant 0 : index
      %c0_12 = arith.constant 0 : index
      %16 = vector.load %arg4[%c0_11, %c0_12] : memref<1x128xf32, #tpu.memory_space<vmem>>, vector<1x128xf32>
      tpu.vector_store %arg4[%c0_11, %c0_12], %15 {strides = array<i32>} : memref<1x128xf32, #tpu.memory_space<vmem>>, vector<1x128xf32>,
    } else {
    }
    %c0 = arith.constant 0 : index
    %c0_1 = arith.constant 0 : index
    %3 = vector.load %arg1[%c0, %c0_1] : memref<16x128xf32, #tpu.memory_space<vmem>>, vector<16x128xf32>
    %c0_2 = arith.constant 0 : index
    %c0_3 = arith.constant 0 : index
    %4 = vector.load %arg2[%c0_2, %c0_3] : memref<16x128xf32, #tpu.memory_space<vmem>>, vector<16x128xf32>
    %5 = arith.subf %3, %4 : vector<16x128xf32>
    %6 = arith.mulf %5, %5 : vector<16x128xf32>
    %c0_4 = arith.constant 0 : index
    %c0_5 = arith.constant 0 : index
    %7 = vector.load %arg4[%c0_4, %c0_5] : memref<1x128xf32, #tpu.memory_space<vmem>>, vector<1x128xf32>
    %cst = arith.constant dense<0.000000e+00> : vector<128xf32>
    %8 = vector.multi_reduction <add>, %6, %cst [0] : vector<16x128xf32> to vector<128xf32>
    %9 = vector.shape_cast %8 : vector<128xf32> to vector<1x128xf32>
    %10 = arith.addf %7, %9 : vector<1x128xf32>
    %c0_6 = arith.constant 0 : index
    %c0_7 = arith.constant 0 : index
    %11 = vector.load %arg4[%c0_6, %c0_7] : memref<1x128xf32, #tpu.memory_space<vmem>>, vector<1x128xf32>
    tpu.vector_store %arg4[%c0_6, %c0_7], %10 {strides = array<i32>} : memref<1x128xf32, #tpu.memory_space<vmem>>, vector<1x128xf32>,
    %c0_i32_8 = arith.constant 0 : i32
    %12 = arith.cmpi eq, %arg0, %c0_i32_8 : i32
    %13 = arith.extui %12 : i1 to i32
    %c0_i32_9 = arith.constant 0 : i32
    %14 = arith.cmpi ne, %13, %c0_i32_9 : i32
    scf.if %14 {
      %c0_10 = arith.constant 0 : index
      %c0_11 = arith.constant 0 : index
      %15 = vector.load %arg4[%c0_10, %c0_11] : memref<1x128xf32, #tpu.memory_space<vmem>>, vector<1x128xf32>
      %16 = vector.shape_cast %15 : vector<1x128xf32> to vector<1x1x128xf32>
      %cst_12 = arith.constant dense<0.000000e+00> : vector<1xf32>
      %17 = vector.multi_reduction <add>, %16, %cst_12 [1, 2] : vector<1x1x128xf32> to vector<1xf32>
      %18 = vector.shape_cast %17 : vector<1xf32> to vector<1x1x1xf32>
      %19 = vector.extract %18[0, 0, 0] : f32 from vector<1x1x1xf32>
      %cst_13 = arith.constant 4.8828125E-4 : f32
      %20 = arith.mulf %19, %cst_13 : f32
      %c0_14 = arith.constant 0 : index
      %c0_15 = arith.constant 0 : index
      %21 = memref.load %arg3[%c0_14, %c0_15] : memref<1x1xf32, #tpu.memory_space<smem>>
      memref.store %20, %arg3[%c0_14, %c0_15] : memref<1x1xf32, #tpu.memory_space<smem>>
    } else {
    }
    return
  }
  func.func @transform_0(%arg0: i32) -> (i32, i32) {
    %c0_i32 = arith.constant 0 : i32
    %c0_i32_0 = arith.constant 0 : i32
    return %arg0, %c0_i32 : i32, i32
  }
  func.func @transform_1(%arg0: i32) -> (i32, i32) {
    %c0_i32 = arith.constant 0 : i32
    %c0_i32_0 = arith.constant 0 : i32
    return %arg0, %c0_i32 : i32, i32
  }
  func.func @transform_2(%arg0: i32) -> (i32, i32) {
    %c0_i32 = arith.constant 0 : i32
    %c0_i32_0 = arith.constant 0 : i32
    %c0_i32_1 = arith.constant 0 : i32
    return %c0_i32, %c0_i32_0 : i32, i32
  }
}

</mosaic_0001>

<bundles_post_ra>
// kernel: custom_mse_loss.1
= control target key start
LH: loop header
LB: loop body
LE: loop exit
PB: predicated region body
PF: predicated region fallthrough
CT: control target
= control target key end

     0   :  { %v82_v3 = vmov 0.0   ;;  %s123_s0 = inlined_call_operand.vmem [shape: f32[16,128], index: 0, kind: input, shape index: {}]   ;;  %s124_s1 = inlined_call_operand.vmem [shape: f32[16,128], index: 1, kind: input, shape index: {}]   ;;  %s125_s2 = inlined_call_operand.hbm [shape: f32[1,1], index: 2, kind: output, shape index: {}]  }
   0x1   :  { %v17_v0 = vld [vmem:[%s123_s0] sm:$0xff]  ;;  %v18_v1 = vld [vmem:[%s123_s0 + $0x8] sm:$0xff]  ;;  %16 = vst [vmem:[#allocation2] sm:$0x1] %v82_v3 }
   0x2   :  { %v19_v2 = vld [vmem:[%s124_s1] sm:$0xff]  ;;  %v20_v4 = vld [vmem:[%s124_s1 + $0x8] sm:$0xff] }
   0x3   :  { %v21_v5 = vsub.f32 %v17_v0, %v19_v2 }
   0x4   :  { %7 = vsyncpa [#allocation4], 0  ;;  %v22_v6 = vsub.f32 %v18_v1, %v20_v4  ;;  %vm39_vm0 = vcmask 1040384   ;;  %s70_s19 = scalar_lea.hbm %s125_s2, 16 }
   0x5   :  { %v23_v7 = vmul.f32 %v21_v5, %v21_v5  ;;  %p71_p0 = scmp.ne.s32.totalorder %s125_s2, %s70_s19  ;;  %p74_p1 = scmp.lt.u32.totalorder %s70_s19, %s125_s2 }
   0x6   :  { %v24_v8 = vmul.f32 %v22_v6, %v22_v6 }
   0x7   :  { %p76_p2 = pnand %p74_p1, %p71_p0 }
   0x8   :  { %v26_v9 = vadd.f32 %v24_v8, %v23_v7  ;;  %v25_v15 = vld [vmem:[#allocation2] sm:$0x1] }
   0xa   :  { %v27_v10 = vrot.slane %v26_v9, 4 }
   0xc   :  { %v28_v11 = vadd.f32 %v27_v10, %v26_v9 }
   0xe   :  { %v29_v12 = vrot.slane %v28_v11, 2 }
  0x10   :  { %v30_v13 = vadd.f32 %v29_v12, %v28_v11 }
  0x12   :  { %v31_v14 = vrot.slane %v30_v13, 1 }
  0x14   :  { %v32_v16 = vadd.f32 %v31_v14, %v30_v13 }
  0x16   :  { %v33_v17 = vadd.f32 %v32_v16, %v25_v15 }
  0x18   :  { %34 = vst [vmem:[#allocation2] sm:$0x1] %v33_v17 }
  0x1f   :  { %v38_v18 = vld [vmem:[#allocation2] sm:$0x1] }
  0x20   :  { %v40_v19 = vsel %vm39_vm0, %v38_v18, 0.0 }
  0x21   :  { %41 = vadd.xlane.f32.xlu0 %v40_v19 }
  0xae   :  { %v42_v20 = vpop.xlane.xlu0 %41 }
  0xaf   :  { %v43_v21 = vrot.slane %v42_v20, 4 }
  0xb1   :  { %v44_v22 = vadd.f32 %v43_v21, %v42_v20 }
  0xb3   :  { %v45_v23 = vrot.slane %v44_v22, 2 }
  0xb5   :  { %v46_v24 = vadd.f32 %v45_v23, %v44_v22 }
  0xb7   :  { %v47_v25 = vrot.slane %v46_v24, 1 }
  0xb9   :  { %v48_v26 = vadd.f32 %v47_v25, %v46_v24 }
  0xbb   :  { %66 = vpush %v48_v26 }
  0xec   :  { %s67_s0 = spop %66 }
  0xed   :  { %s50_s1 = smul.f32 0.00048828125, %s67_s0 }
  0xef   :  { %52 = sst [smem:[#allocation3]] %s50_s1 }
  0xf0   :  { %79 = shalt.err (!%p76_p2)
}
  0xf1   :  { %s83_s24 = smov [#allocation3]  }
  0xf2   :  { %60 = dma.smem_to_hbm %s83_s24, 16, %s125_s2, [#allocation4]  }
  0xf3   :  { %80 = dma.done.wait [#allocation4], 16  }
  0xf4   :  { %81 = vsyncadd [#allocation4], 4294967280 }
  0xf5   :  { %64 = sfence }
  0xf6   :  { %65 = vsyncpa [#allocation4], 1 }

</bundles_post_ra>
